<compile_context>
chip_gen: v7x
topology: tpu7x:2x2x1
jax: 0.10.0
libtpu: 0.0.40
codegen_flags: <defaults>
</compile_context>

<pallas_src>
import math
import functools
import numpy as np

import jax
import jax.numpy as jnp
from jax.experimental import pallas as pl
from jax.experimental.pallas import tpu as pltpu

# ----------------------- small-model configuration -----------------------
B = 2                       # batch (number of video/text pairs)
C_IMG, H_IMG, W_IMG = 3, 8, 8
SRC_LENGTHS = [20, 16]      # frames per video (pre-padding)
FEAT2D = 128                # stand-in for the ResNet18 512-d feature (lane-dense)
D = 128                     # stand-in for embed_dim = 1024 (multiple of 128)
NUM_HEADS = 4               # Dh = 32
FFN = 256                   # stand-in for 4096
NUM_LAYERS = 2              # stand-in for the 12-layer MBart encoder
L_TXT = 8                   # text sequence length
VOCAB = 50
MAX_POS = 64
K_TCONV = 5                 # TemporalConv 'K5'

VMEM_LIMIT = 64 * 1024 * 1024   # explicit scoped-VMEM budget (fits v7x's 64 MiB)


def _invariant_spec(shape, index_map):
    """Grid-invariant weight BlockSpec: single-buffered (no double-buffer waste)."""
    try:
        return pl.BlockSpec(shape, index_map, pipeline_mode=pl.Buffered(1))
    except TypeError:   # older jax without pipeline_mode on BlockSpec
        return pl.BlockSpec(shape, index_map)


# --------------------------- tiled matmul kernel ---------------------------
def _matmul_kernel(a_ref, b_ref, o_ref, acc_ref):
    @pl.when(pl.program_id(2) == 0)
    def _():
        acc_ref[...] = jnp.zeros_like(acc_ref)
    acc_ref[...] += jnp.dot(a_ref[...], b_ref[...],
                            preferred_element_type=jnp.float32)
    @pl.when(pl.program_id(2) == pl.num_programs(2) - 1)
    def _():
        o_ref[...] = acc_ref[...].astype(o_ref.dtype)


def _pick_tile(dim, tile):
    return tile if (dim >= tile and dim % tile == 0) else dim


def pallas_matmul(a, b, out_dtype=jnp.float32, tm=256, tn=256, tk=512):
    """(M, K) @ (K, N) -> (M, N). bf16 operands, f32 accumulation, K-last grid.
    TODO(synk): per-generation tiles — 128 for v5e's 128x128 MXU, 256 for
    v6e/v7x; shrink tk on v7x so 2*(A+B tiles)+acc stays under ~32 MiB."""
    M, K = a.shape
    K2, N = b.shape
    assert K == K2
    tm, tn, tk = _pick_tile(M, tm), _pick_tile(N, tn), _pick_tile(K, tk)
    return pl.pallas_call(
        _matmul_kernel,
        grid=(M // tm, N // tn, K // tk),
        in_specs=[pl.BlockSpec((tm, tk), lambda i, j, k: (i, k)),
                  pl.BlockSpec((tk, tn), lambda i, j, k: (k, j))],
        out_specs=pl.BlockSpec((tm, tn), lambda i, j, k: (i, j)),
        out_shape=jax.ShapeDtypeStruct((M, N), out_dtype),
        scratch_shapes=[pltpu.VMEM((tm, tn), jnp.float32)],
        compiler_params=pltpu.CompilerParams(
            dimension_semantics=("parallel", "parallel", "arbitrary")),
    )(a.astype(jnp.bfloat16), b.astype(jnp.bfloat16))


# ------------- fused pad_sequence + TemporalConv (2x conv+BN+ReLU+pool) -------------
def _temporal_conv_kernel(off_ref, len_ref, feats_hbm,
                          w1_ref, sc1_ref, sh1_ref, w2_ref, sc2_ref, sh2_ref,
                          o_ref, xbuf, sem, *, K, max_len):
    """One batch element: gather its frames from HBM (scalar-prefetched offset),
    zero the pad_sequence tail, then Conv1d(K)+BN+ReLU+MaxPool(2) twice."""
    b = pl.program_id(0)
    off = off_ref[b]
    seq_len = len_ref[b]

    # single fixed-size DMA window starting at this sequence's frame offset
    cp = pltpu.make_async_copy(feats_hbm.at[pl.ds(off, max_len)], xbuf, sem)
    cp.start()
    cp.wait()

    x = xbuf[...].astype(jnp.float32)                           # (max_len, Cin)
    row = jax.lax.broadcasted_iota(jnp.int32, x.shape, 0)
    x = jnp.where(row < seq_len, x, 0.0)                        # pad_sequence tail

    def conv_bn_relu_pool(v, w_ref, scale, shift):
        T = v.shape[0]
        Cout = w_ref.shape[-1]
        t_out = T - K + 1
        acc = jnp.zeros((t_out, Cout), jnp.float32)
        for k in range(K):                                      # K accumulated dots
            acc += jnp.dot(v[k:k + t_out].astype(jnp.bfloat16), w_ref[k],
                           preferred_element_type=jnp.float32)
        y = jnp.maximum(acc * scale + shift, 0.0)               # conv bias + eval BN + ReLU
        t_pool = t_out // 2                                     # fused MaxPool1d(k=2)
        return jnp.max(y[:2 * t_pool].reshape(t_pool, 2, Cout), axis=1)

    h = conv_bn_relu_pool(x, w1_ref, sc1_ref[...], sh1_ref[...])
    h = conv_bn_relu_pool(h, w2_ref, sc2_ref[...], sh2_ref[...])
    o_ref[0] = h.astype(o_ref.dtype)


def pallas_temporal_conv(feats_padded, offsets, lens, max_len, p):
    """feats_padded: (T_total + max_len, Cin) bf16 in HBM (zero-padded tail so
    the fixed-size DMA window never reads out of bounds)."""
    Bx = int(offsets.shape[0])
    Cin = feats_padded.shape[1]
    Cout = p['tc1_w'].shape[-1]
    T1 = (max_len - K_TCONV + 1) // 2
    T2 = (T1 - K_TCONV + 1) // 2
    kernel = functools.partial(_temporal_conv_kernel, K=K_TCONV, max_len=max_len)

    def wspec(shape):
        ndim = len(shape)
        return _invariant_spec(shape, lambda b, off, ln, _n=ndim: (0,) * _n)

    grid_spec = pltpu.PrefetchScalarGridSpec(
        num_scalar_prefetch=2,
        grid=(Bx,),
        in_specs=[
            pl.BlockSpec(memory_space=pl.ANY),          # frame features stay in HBM
            wspec(p['tc1_w'].shape), wspec(p['tc1_scale'].shape), wspec(p['tc1_shift'].shape),
            wspec(p['tc2_w'].shape), wspec(p['tc2_scale'].shape), wspec(p['tc2_shift'].shape),
        ],
        out_specs=pl.BlockSpec((1, T2, Cout), lambda b, off, ln: (b, 0, 0)),
        scratch_shapes=[pltpu.VMEM((max_len, Cin), jnp.bfloat16),
                        pltpu.SemaphoreType.DMA],
    )
    return pl.pallas_call(
        kernel,
        grid_spec=grid_spec,
        out_shape=jax.ShapeDtypeStruct((Bx, T2, Cout), jnp.bfloat16),
        compiler_params=pltpu.CompilerParams(dimension_semantics=("parallel",)),
    )(offsets, lens, feats_padded,
      p['tc1_w'], p['tc1_scale'], p['tc1_shift'],
      p['tc2_w'], p['tc2_scale'], p['tc2_shift'])


# ------------------- multi-layer MBart encoder (one pallas_call) -------------------
def _encoder_stack_kernel(x_ref, bias_ref,
                          ln1g_ref, ln1b_ref, wqkv_ref, bqkv_ref, wo_ref, bo_ref,
                          ln2g_ref, ln2b_ref, w1_ref, b1_ref, w2_ref, b2_ref,
                          o_ref, state_ref, *, num_heads):
    """grid=(num_layers,). The (B, S, D) activation lives in a VMEM f32 scratch
    across layers; layer-indexed weights are double-buffered (prefetch l+1)."""
    layer = pl.program_id(0)

    @pl.when(layer == 0)
    def _():
        state_ref[...] = x_ref[...].astype(jnp.float32)

    x3 = state_ref[...]                                    # (B, S, D) f32
    Bx, S, Dm = x3.shape
    Dh = Dm // num_heads
    x = x3.reshape(Bx * S, Dm)                             # dense M = B*S rows

    def _ln(v, g, b):
        m = jnp.mean(v, axis=-1, keepdims=True)
        c = v - m
        var = jnp.mean(c * c, axis=-1, keepdims=True)
        return c * jax.lax.rsqrt(var + 1e-5) * g + b

    def _split_heads(t):                                   # (B*S, D) -> (B*H, S, Dh)
        return (t.reshape(Bx, S, num_heads, Dh)
                 .transpose(0, 2, 1, 3)
                 .reshape(Bx * num_heads, S, Dh))

    # --- self-attention block ---
    h = _ln(x, ln1g_ref[0], ln1b_ref[0])
    qkv = jnp.dot(h.astype(jnp.bfloat16), wqkv_ref[0],
                  preferred_element_type=jnp.float32) + bqkv_ref[0]      # (B*S, 3D)
    # 1/sqrt(Dh) already folded into the Q columns of wqkv at param prep.
    q = _split_heads(qkv[:, :Dm])
    k = _split_heads(qkv[:, Dm:2 * Dm])
    v = _split_heads(qkv[:, 2 * Dm:])

    s = jnp.einsum('zqd,zkd->zqk', q.astype(jnp.bfloat16), k.astype(jnp.bfloat16),
                   preferred_element_type=jnp.float32)                   # (B*H, S, S)
    bias = jnp.broadcast_to(bias_ref[...][:, None],
                            (Bx, num_heads, 1, S)).reshape(Bx * num_heads, 1, S)
    s = s + bias
    s = s - jnp.max(s, axis=-1, keepdims=True)
    p = jnp.exp(s)
    p = p * pl.reciprocal(jnp.sum(p, axis=-1, keepdims=True), approx=True)
    ctx = jnp.einsum('zqk,zkd->zqd', p.astype(jnp.bfloat16), v.astype(jnp.bfloat16),
                     preferred_element_type=jnp.float32)                 # (B*H, S, Dh)
    attn = (ctx.reshape(Bx, num_heads, S, Dh)
               .transpose(0, 2, 1, 3)
               .reshape(Bx * S, Dm))
    x = x + jnp.dot(attn.astype(jnp.bfloat16), wo_ref[0],
                    preferred_element_type=jnp.float32) + bo_ref[0]

    # --- FFN block ---
    h = _ln(x, ln2g_ref[0], ln2b_ref[0])
    f = jnp.dot(h.astype(jnp.bfloat16), w1_ref[0],
                preferred_element_type=jnp.float32) + b1_ref[0]
    # TODO(synk): MBart uses exact (erf) GELU; tanh approximation used in-kernel.
    f = jax.nn.gelu(f, approximate=True)
    x = x + jnp.dot(f.astype(jnp.bfloat16), w2_ref[0],
                    preferred_element_type=jnp.float32) + b2_ref[0]

    x3_new = x.reshape(Bx, S, Dm)
    state_ref[...] = x3_new

    @pl.when(layer == pl.num_programs(0) - 1)
    def _():
        o_ref[...] = x3_new.astype(o_ref.dtype)


def pallas_encoder_stack(x, bias, stack):
    """All encoder layers in one pallas_call. x: (B, S, D); bias: (B, 1, S)."""
    Bx, S, Dm = x.shape
    L = stack['wqkv'].shape[0]
    kernel = functools.partial(_encoder_stack_kernel, num_heads=NUM_HEADS)

    def lspec(arr):   # layer-indexed weight: block = 1 layer slice
        ndim = arr.ndim
        return pl.BlockSpec((1,) + arr.shape[1:],
                            lambda l, _n=ndim: (l,) + (0,) * (_n - 1))

    def bspec(shape):  # activation / mask: constant index -> VMEM-resident
        ndim = len(shape)
        return pl.BlockSpec(shape, lambda l, _n=ndim: (0,) * _n)

    names = ['ln1_g', 'ln1_b', 'wqkv', 'bqkv', 'wo', 'bo',
             'ln2_g', 'ln2_b', 'fc1_w', 'fc1_b', 'fc2_w', 'fc2_b']
    return pl.pallas_call(
        kernel,
        grid=(L,),
        in_specs=[bspec((Bx, S, Dm)), bspec((Bx, 1, S))] + [lspec(stack[n]) for n in names],
        out_specs=bspec((Bx, S, Dm)),
        out_shape=jax.ShapeDtypeStruct((Bx, S, Dm), jnp.bfloat16),
        scratch_shapes=[pltpu.VMEM((Bx, S, Dm), jnp.float32)],
        compiler_params=pltpu.CompilerParams(
            dimension_semantics=("arbitrary",),
            vmem_limit_bytes=VMEM_LIMIT),
    )(x.astype(jnp.bfloat16), bias.astype(jnp.float32), *[stack[n] for n in names])


# ------------------------------ CLIP logits kernel ------------------------------
def _clip_kernel(img_ref, txt_ref, scale_ref, lpi_ref):
    img = img_ref[...].astype(jnp.float32)
    txt = txt_ref[...].astype(jnp.float32)
    img = img * jax.lax.rsqrt(jnp.sum(img * img, axis=-1, keepdims=True) + 1e-12)
    txt = txt * jax.lax.rsqrt(jnp.sum(txt * txt, axis=-1, keepdims=True) + 1e-12)
    ls = jnp.exp(scale_ref[0, 0])
    lpi_ref[...] = ls * jax.lax.dot_general(img, txt, (((1,), (1,)), ((), ())),
                                            preferred_element_type=jnp.float32)


def pallas_clip_logits(image_features, text_features, logit_scale):
    Bx = image_features.shape[0]
    lpi = pl.pallas_call(
        _clip_kernel,
        out_shape=jax.ShapeDtypeStruct((Bx, Bx), jnp.float32),
    )(image_features, text_features, logit_scale.reshape(1, 1).astype(jnp.float32))
    lpt = lpi.T                                # logits_per_text is the transpose
    gt = jnp.eye(Bx, dtype=jnp.float32)        # constant identity ground truth
    return lpi, lpt, gt


# ------------------------------ JAX glue (model) ------------------------------
def layer_norm(x, g, b, eps=1e-5):
    x = x.astype(jnp.float32)
    m = jnp.mean(x, axis=-1, keepdims=True)
    v = jnp.mean((x - m) ** 2, axis=-1, keepdims=True)
    return (x - m) * jax.lax.rsqrt(v + eps) * g + b


def mbart_encoder(inputs_embeds, attention_mask, p):
    # TODO(synk): pretrained MBart encoder (12 layers, d=1024) replaced by a
    # deterministic scaled-down stand-in with the same architectural skeleton.
    Bx, S, Dm = inputs_embeds.shape
    x = inputs_embeds.astype(jnp.float32) * math.sqrt(Dm)   # MBart embed_scale
    x = x + p['pos_emb'][None, :S, :]
    x = layer_norm(x, p['ln_emb_g'], p['ln_emb_b'])
    bias = ((1.0 - attention_mask.astype(jnp.float32)) * -1e9)[:, None, :]  # (B,1,S)
    x = pallas_encoder_stack(x, bias, p['stack'])            # one fused kernel
    x = layer_norm(x, p['ln_f_g'], p['ln_f_b'])
    return x


def feature_extracter(frames_nchw, lengths, p):
    """The spec'd `resnet` module + TemporalConv:
    backbone features -> split by lengths -> pad_sequence -> conv/pool stack."""
    T_total = frames_nchw.shape[0]
    flat = frames_nchw.reshape(T_total, -1)
    # TODO(synk): pretrained torchvision ResNet18 backbone; stand-in is a single
    # Pallas projection from the flattened frame to a FEAT2D feature.
    feats = pallas_matmul(flat, p['resnet_w'], out_dtype=jnp.bfloat16)   # (T_total, FEAT2D)

    # pad_sequence(batch_first=True): done inside the conv kernel with scalar-
    # prefetched offsets/lengths (no host pad/stack, no padded HBM tensor).
    max_len = int(max(lengths))
    feats = jnp.pad(feats, ((0, max_len), (0, 0)))           # guard DMA window
    offsets = jnp.asarray(np.cumsum([0] + list(lengths[:-1])), jnp.int32)
    lens = jnp.asarray(list(lengths), jnp.int32)
    # TemporalConv conv_type=2: K5 -> P2 -> K5 -> P2, fully fused per batch elt.
    return pallas_temporal_conv(feats, offsets, lens, max_len, p)        # (B, N', D)


def image_clip_forward(src_input, p):
    x = feature_extracter(src_input['input_ids'], src_input['src_length_batch'],
                          p['feat'])
    attention_mask = src_input['attention_mask']              # (B, N')
    Bx = x.shape[0]
    cls = jnp.broadcast_to(p['cls_token'], (Bx, 1, x.shape[-1]))
    x = jnp.concatenate([cls, x.astype(jnp.float32)], axis=1)
    attention_mask = jnp.pad(attention_mask, ((0, 0), (1, 0)), constant_values=1.0)
    h = mbart_encoder(x, attention_mask, p['visual_encoder'])
    return pallas_matmul(h[:, 0, :], p['lm_head_w'])          # linear head, no bias


def text_clip_forward(tgt_input, p):
    ids = tgt_input['input_ids']
    mask = tgt_input['attention_mask']
    emb = p['embed_tokens'][ids]                              # (B, L, D)
    txt_logits = mbart_encoder(emb, mask, p['text_encoder'])
    idx = jnp.argmax(ids, axis=-1)
    out = txt_logits[jnp.arange(ids.shape[0]), idx]           # gather at argmax id
    return out, txt_logits                                    # head_type='identy' -> Identity


def slrclip_forward(src_input, tgt_input, params):
    image_features = image_clip_forward(src_input, params['image'])
    text_features, encoder_hidden_states = text_clip_forward(tgt_input, params['text'])
    lpi, lpt, gt = pallas_clip_logits(image_features, text_features,
                                      params['logit_scale'])
    return lpi, lpt, gt, encoder_hidden_states


# ------------------------------ parameter init ------------------------------
def fold_bn(conv_bias, gamma, beta, mean, var, eps=1e-5):
    scale = gamma / jnp.sqrt(var + eps)
    shift = (conv_bias - mean) * scale + beta
    return scale[None, :].astype(jnp.float32), shift[None, :].astype(jnp.float32)


def init_encoder(key, d, ffn, num_layers, max_pos, num_heads):
    std = 0.02
    keys = jax.random.split(key, 5)
    dh = d // num_heads
    wqkv = std * jax.random.normal(keys[1], (num_layers, d, 3 * d), jnp.float32)
    # fold MBart's 1/sqrt(Dh) query scaling into the Q columns (review item)
    wqkv = wqkv.at[:, :, :d].multiply(1.0 / math.sqrt(dh))
    stack = {
        'ln1_g': jnp.ones((num_layers, 1, d), jnp.float32),
        'ln1_b': jnp.zeros((num_layers, 1, d), jnp.float32),
        'wqkv': wqkv.astype(jnp.bfloat16),
        'bqkv': jnp.zeros((num_layers, 1, 3 * d), jnp.float32),
        'wo': (std * jax.random.normal(keys[2], (num_layers, d, d), jnp.float32)
               ).astype(jnp.bfloat16),
        'bo': jnp.zeros((num_layers, 1, d), jnp.float32),
        'ln2_g': jnp.ones((num_layers, 1, d), jnp.float32),
        'ln2_b': jnp.zeros((num_layers, 1, d), jnp.float32),
        'fc1_w': (std * jax.random.normal(keys[3], (num_layers, d, ffn), jnp.float32)
                  ).astype(jnp.bfloat16),
        'fc1_b': jnp.zeros((num_layers, 1, ffn), jnp.float32),
        'fc2_w': (std * jax.random.normal(keys[4], (num_layers, ffn, d), jnp.float32)
                  ).astype(jnp.bfloat16),
        'fc2_b': jnp.zeros((num_layers, 1, d), jnp.float32),
    }
    return {
        'pos_emb': std * jax.random.normal(keys[0], (max_pos, d), jnp.float32),
        'ln_emb_g': jnp.ones((d,), jnp.float32), 'ln_emb_b': jnp.zeros((d,), jnp.float32),
        'ln_f_g': jnp.ones((d,), jnp.float32), 'ln_f_b': jnp.zeros((d,), jnp.float32),
        'stack': stack,
    }


def init_params(key):
    k = jax.random.split(key, 10)
    std = 0.02
    # eval-mode BatchNorm stats (gamma=1, beta=0, mean=0, var=1) folded with conv bias
    tc1_b = std * jax.random.normal(k[0], (D,), jnp.float32)
    tc2_b = std * jax.random.normal(k[1], (D,), jnp.float32)
    ones, zeros = jnp.ones((D,), jnp.float32), jnp.zeros((D,), jnp.float32)
    tc1_scale, tc1_shift = fold_bn(tc1_b, ones, zeros, zeros, ones)
    tc2_scale, tc2_shift = fold_bn(tc2_b, ones, zeros, zeros, ones)

    params = {
        'image': {
            'feat': {
                'resnet_w': (std * jax.random.normal(
                    k[2], (C_IMG * H_IMG * W_IMG, FEAT2D), jnp.float32)).astype(jnp.bfloat16),
                # conv weight layout (K, Cin, Cout): K accumulated dots in-kernel
                'tc1_w': (std * jax.random.normal(
                    k[3], (K_TCONV, FEAT2D, D), jnp.float32)).astype(jnp.bfloat16),
                'tc1_scale': tc1_scale, 'tc1_shift': tc1_shift,
                'tc2_w': (std * jax.random.normal(
                    k[4], (K_TCONV, D, D), jnp.float32)).astype(jnp.bfloat16),
                'tc2_scale': tc2_scale, 'tc2_shift': tc2_shift,
            },
            'cls_token': std * jax.random.normal(k[5], (1, 1, D), jnp.float32),
            'visual_encoder': init_encoder(k[6], D, FFN, NUM_LAYERS, MAX_POS, NUM_HEADS),
            'lm_head_w': (std * jax.random.normal(k[7], (D, D), jnp.float32)
                          ).astype(jnp.bfloat16),
        },
        'text': {
            'embed_tokens': std * jax.random.normal(k[8], (VOCAB, D), jnp.float32),
            'text_encoder': init_encoder(k[9], D, FFN, NUM_LAYERS, MAX_POS, NUM_HEADS),
        },
        'logit_scale': jnp.asarray(np.log(1.0 / 0.07), jnp.float32),
    }
    return params


def downsampled_len(L):
    # Conv1d(k=5) -> MaxPool(2) -> Conv1d(k=5) -> MaxPool(2)
    return ((L - 4) // 2 - 4) // 2


# ------------------------------------ main ------------------------------------
if __name__ == "__main__":
    key = jax.random.PRNGKey(0)
    kp, kf, kt = jax.random.split(key, 3)

    params = init_params(kp)

    # ---- src_input (video side) ----
    T_total = sum(SRC_LENGTHS)
    frames = jax.random.normal(kf, (T_total, C_IMG, H_IMG, W_IMG), jnp.float32)  # NCHW
    n_out = downsampled_len(max(SRC_LENGTHS))
    img_mask = np.zeros((B, n_out), np.float32)
    for i, L in enumerate(SRC_LENGTHS):
        img_mask[i, :max(downsampled_len(L), 1)] = 1.0
    src_input = {
        'input_ids': frames,
        'src_length_batch': SRC_LENGTHS,
        'attention_mask': jnp.asarray(img_mask),
    }

    # ---- tgt_input (text side) ----
    ids_np = np.array(jax.random.randint(kt, (B, L_TXT), 2, VOCAB))  # writable host copy
    txt_lens = [L_TXT, L_TXT - 2]
    txt_mask = np.zeros((B, L_TXT), np.float32)
    for i, L in enumerate(txt_lens):
        txt_mask[i, :L] = 1.0
        ids_np[i, L:] = 1                       # pad token id
    tgt_input = {
        'input_ids': jnp.asarray(ids_np, jnp.int32),
        'attention_mask': jnp.asarray(txt_mask),
    }

    lpi, lpt, gt, hidden = slrclip_forward(src_input, tgt_input, params)
    jax.block_until_ready((lpi, lpt, gt, hidden))

    assert lpi.shape == (B, B) and lpt.shape == (B, B) and gt.shape == (B, B)
    assert hidden.shape == (B, L_TXT, D)
    np.testing.assert_allclose(np.asarray(lpt), np.asarray(lpi).T, rtol=1e-5, atol=1e-5)
    np.testing.assert_allclose(np.asarray(gt), np.eye(B, dtype=np.float32), atol=0)
    assert np.all(np.isfinite(np.asarray(lpi)))
    assert np.all(np.isfinite(np.asarray(hidden.astype(jnp.float32))))

    print("KERNEL_OK")
</pallas_src>

<mosaic_0001>
module attributes {stable_mosaic.version = 11 : i64} {
  func.func @_matmul_kernel(%arg0: i32, %arg1: i32, %arg2: i32, %arg3: memref<36x192xbf16, #tpu.memory_space<vmem>>, %arg4: memref<192x128xbf16, #tpu.memory_space<vmem>>, %arg5: memref<36x128xbf16, #tpu.memory_space<vmem>>, %arg6: memref<36x128xf32, #tpu.memory_space<vmem>>) attributes {dimension_semantics = [#tpu.dimension_semantics<parallel>, #tpu.dimension_semantics<parallel>, #tpu.dimension_semantics<arbitrary>], iteration_bounds = array<i64: 1, 1, 1>, scalar_prefetch = 0 : i64, scratch_operands = 1 : i64, tpu.core_type = #tpu.core_type<tc>, window_params = [{transform_indices = @transform_0, window_bounds = array<i64: 36, 192>}, {transform_indices = @transform_1, window_bounds = array<i64: 192, 128>}, {transform_indices = @transform_2, window_bounds = array<i64: 36, 128>}]} {
    %c0_i32 = arith.constant 0 : i32
    %0 = arith.cmpi eq, %arg2, %c0_i32 : i32
    %1 = arith.extui %0 : i1 to i32
    %c0_i32_0 = arith.constant 0 : i32
    %2 = arith.cmpi ne, %1, %c0_i32_0 : i32
    scf.if %2 {
      %cst_10 = arith.constant 0.000000e+00 : f32
      %12 = vector.broadcast %cst_10 : f32 to vector<36x128xf32>
      %c0_11 = arith.constant 0 : index
      %c0_12 = arith.constant 0 : index
      %13 = vector.load %arg6[%c0_11, %c0_12] : memref<36x128xf32, #tpu.memory_space<vmem>>, vector<36x128xf32>
      tpu.vector_store %arg6[%c0_11, %c0_12], %12 {strides = array<i32>} : memref<36x128xf32, #tpu.memory_space<vmem>>, vector<36x128xf32>,
    } else {
    }
    %c0 = arith.constant 0 : index
    %c0_1 = arith.constant 0 : index
    %3 = vector.load %arg6[%c0, %c0_1] : memref<36x128xf32, #tpu.memory_space<vmem>>, vector<36x128xf32>
    %c0_2 = arith.constant 0 : index
    %c0_3 = arith.constant 0 : index
    %4 = vector.load %arg3[%c0_2, %c0_3] : memref<36x192xbf16, #tpu.memory_space<vmem>>, vector<36x192xbf16>
    %c0_4 = arith.constant 0 : index
    %c0_5 = arith.constant 0 : index
    %5 = vector.load %arg4[%c0_4, %c0_5] : memref<192x128xbf16, #tpu.memory_space<vmem>>, vector<192x128xbf16>
    %cst = arith.constant dense<0.000000e+00> : vector<36x128xf32>
    %6 = tpu.matmul %4, %5, %cst {dimension_numbers = #tpu.dot_dimension_numbers<[1], [0], [0], [1], [0, 0, 1, 1], [], []>} : vector<36x192xbf16>, vector<192x128xbf16>, vector<36x128xf32> -> vector<36x128xf32>
    %7 = arith.addf %3, %6 : vector<36x128xf32>
    %c0_6 = arith.constant 0 : index
    %c0_7 = arith.constant 0 : index
    %8 = vector.load %arg6[%c0_6, %c0_7] : memref<36x128xf32, #tpu.memory_space<vmem>>, vector<36x128xf32>
    tpu.vector_store %arg6[%c0_6, %c0_7], %7 {strides = array<i32>} : memref<36x128xf32, #tpu.memory_space<vmem>>, vector<36x128xf32>,
    %c0_i32_8 = arith.constant 0 : i32
    %9 = arith.cmpi eq, %arg2, %c0_i32_8 : i32
    %10 = arith.extui %9 : i1 to i32
    %c0_i32_9 = arith.constant 0 : i32
    %11 = arith.cmpi ne, %10, %c0_i32_9 : i32
    scf.if %11 {
      %c0_10 = arith.constant 0 : index
      %c0_11 = arith.constant 0 : index
      %12 = vector.load %arg6[%c0_10, %c0_11] : memref<36x128xf32, #tpu.memory_space<vmem>>, vector<36x128xf32>
      %13 = arith.truncf %12 : vector<36x128xf32> to vector<36x128xbf16>
      %c0_12 = arith.constant 0 : index
      %c0_13 = arith.constant 0 : index
      %14 = vector.load %arg5[%c0_12, %c0_13] : memref<36x128xbf16, #tpu.memory_space<vmem>>, vector<36x128xbf16>
      tpu.vector_store %arg5[%c0_12, %c0_13], %13 {strides = array<i32>} : memref<36x128xbf16, #tpu.memory_space<vmem>>, vector<36x128xbf16>,
    } else {
    }
    return
  }
  func.func @transform_0(%arg0: i32, %arg1: i32, %arg2: i32) -> (i32, i32) {
    %c0_i32 = arith.constant 0 : i32
    return %arg0, %arg2 : i32, i32
  }
  func.func @transform_1(%arg0: i32, %arg1: i32, %arg2: i32) -> (i32, i32) {
    %c0_i32 = arith.constant 0 : i32
    return %arg2, %arg1 : i32, i32
  }
  func.func @transform_2(%arg0: i32, %arg1: i32, %arg2: i32) -> (i32, i32) {
    %c0_i32 = arith.constant 0 : i32
    return %arg0, %arg1 : i32, i32
  }
}

</mosaic_0001>

<bundles_post_ra>
// kernel: tpu_custom_call.1
= control target key start
LH: loop header
LB: loop body
LE: loop exit
PB: predicated region body
PF: predicated region fallthrough
CT: control target
= control target key end

     0   :  { %7 = vsyncpa [#allocation4], 0  ;;  %s568_s0 = inlined_call_operand.hbm [shape: bf16[36,192], index: 0, kind: input, shape index: {}]   ;;  %s569_s1 = inlined_call_operand.hbm [shape: bf16[192,128], index: 1, kind: input, shape index: {}]   ;;  %s570_s2 = inlined_call_operand.hbm [shape: bf16[36,128], index: 2, kind: output, shape index: {}]  }
   0x1   :  { %8 = vsyncpa [#allocation7], 0 }
   0x2   :  { %9 = vsyncpa [#allocation5], 0  ;;  %s475_s9 = smov [#allocation3]   ;;  %s403_s13 = scalar_lea.hbm %s568_s0, 640 }
   0x3   :  { %s15_s10 = sshll.u32 %s475_s9, 4  ;;  %p404_p0 = scmp.ne.s32.totalorder %s568_s0, %s403_s13  ;;  %s16_s10 = int_to_ptr.vmem [resolvable:$true] %s15_s10 }
   0x4   :  { %p407_p1 = scmp.lt.u32.totalorder %s403_s13, %s568_s0 }
   0x6   :  { %p409_p2 = pnand %p407_p1, %p404_p0 }
   0x8   :  { %412 = shalt.err (!%p409_p2)
}
   0x9   :  { %s413_s18 = scalar_lea.vmem %s16_s10, 640  ;;  %p418_p4 = scmp.lt.s32.totalorder %s16_s10, %s16_s10 }
   0xa   :  { %p414_p3 = scmp.ne.s32.totalorder %s16_s10, %s413_s18  ;;  %p419_p5 = scmp.lt.s32.totalorder %s413_s18, %s413_s18 }
   0xc   :  { %p420_p6 = por %p419_p5, %p418_p4 }
   0xe   :  { %p421_p7 = pnand %p420_p6, %p414_p3 }
  0x10   :  { %424 = shalt.err (!%p421_p7)
}
  0x11   :  { %s476_s19 = smov 128   ;;  %s477_s20 = smov 8  }
  0x12   :  { %21 = dma.hbm_to_vmem [thread:$0]  %s568_s0, 640, %s16_s10, [#allocation4], %s476_s19, %s476_s19, %s477_s20  }
  0x13   :  { %s478_s23 = smov [#allocation6]   ;;  %s425_s27 = scalar_lea.hbm %s569_s1, 1536 }
  0x14   :  { %s27_s24 = sshll.u32 %s478_s23, 4  ;;  %p426_p8 = scmp.ne.s32.totalorder %s569_s1, %s425_s27  ;;  %s28_s24 = int_to_ptr.vmem [resolvable:$true] %s27_s24 }
  0x15   :  { %p429_p9 = scmp.lt.u32.totalorder %s425_s27, %s569_s1 }
  0x17   :  { %p431_p10 = pnand %p429_p9, %p426_p8 }
  0x19   :  { %434 = shalt.err (!%p431_p10)
}
  0x1a   :  { %s435_s4 = scalar_lea.vmem %s28_s24, 1536  ;;  %p440_p12 = scmp.lt.s32.totalorder %s28_s24, %s28_s24 }
  0x1b   :  { %p436_p11 = scmp.ne.s32.totalorder %s28_s24, %s435_s4  ;;  %p441_p13 = scmp.lt.s32.totalorder %s435_s4, %s435_s4 }
  0x1d   :  { %p442_p0 = por %p441_p13, %p440_p12 }
  0x1f   :  { %p443_p1 = pnand %p442_p0, %p436_p11 }
  0x21   :  { %446 = shalt.err (!%p443_p1)
}
  0x22   :  { %s479_s0 = smov 64   ;;  %s480_s5 = smov 4  }
  0x23   :  { %33 = dma.hbm_to_vmem [thread:$0]  %s569_s1, 1536, %s28_s24, [#allocation7], %s479_s0, %s479_s0, %s480_s5  }
  0x24   :  { %469 = dma.done.wait [#allocation4], 640  }
  0x25   :  { %470 = vsyncadd [#allocation4], 4294966656 }
  0x26   :  { %471 = dma.done.wait [#allocation7], 1536  }
  0x27   :  { %472 = vsyncadd [#allocation7], 4294965760  ;;  %v481_v0 = vmov 0   ;;  %v482_v1 = vmov 0.0   ;;  %v383_v2 = vld [vmem:[#allocation6] sm:$0xff]   ;;  %v384_v3 = vld [vmem:[#allocation6 + $0x8] sm:$0xff]  }
  0x28   :  { %350 = vmatprep.subr.bf16.mxu1 %v481_v0  ;;  %190 = vmatprep.subr.bf16.mxu0 %v481_v0  ;;  %49 = vst [vmem:[#allocation2 + $0x20] sm:$0xf] %v482_v1  ;;  %v385_v4 = vld [vmem:[#allocation6 + $0x10] sm:$0xff]   ;;  %v386_v5 = vld [vmem:[#allocation6 + $0x18] sm:$0xff]   ;;  %vm180_vm0 = vcmask 523264   ;;  %v387_v7 = vld [vmem:[#allocation6 + $0x20] sm:$0xff]  }
  0x29   :  { %362 = vmatpush1.bf16.msra.mxu1 %v383_v2  ;;  %191 = vmatpush1.bf16.msra.mxu0 %v383_v2  ;;  %v397_v6 = vld [vmem:[#allocation3 + $0x14] ss:$8 sps:$4 sm:$0xff]   ;;  %v400_v8 = vld [vmem:[#allocation3 + $0x4] ss:$8 sps:$4 sm:$0xff]   ;;  %v395_v17 = vld [vmem:[#allocation3 + $0x10] ss:$8 sps:$4 sm:$0xff]  }
  0x2a   :  { %351 = vmatprep.subr.bf16.mxu1 %v481_v0  ;;  %192 = vmatprep.subr.bf16.mxu0 %v481_v0  ;;  %v388_v9 = vld [vmem:[#allocation6 + $0x28] sm:$0xff]   ;;  %v389_v10 = vld [vmem:[#allocation6 + $0x30] sm:$0xff]   ;;  %v390_v11 = vld [vmem:[#allocation6 + $0x38] sm:$0xff]   ;;  %s483_s1 = smov [#allocation8]  }
  0x2b   :  { %327 = vmatprep.mubr.msk.bf16.mxu1 %vm180_vm0, %v397_v6  ;;  %326 = vmatprep.mubr.msk.bf16.mxu0 %vm180_vm0, %v400_v8  ;;  %v391_v12 = vld [vmem:[#allocation6 + $0x40] sm:$0xff]   ;;  %v392_v13 = vld [vmem:[#allocation6 + $0x48] sm:$0xff]   ;;  %v393_v14 = vld [vmem:[#allocation6 + $0x50] sm:$0xff]   ;;  %s295_s8 = sshll.u32 %s483_s1, 4  ;;  %s296_s8 = int_to_ptr.vmem [resolvable:$true] %s295_s8 }
  0x2c   :  { %v394_v15 = vld [vmem:[#allocation6 + $0x58] sm:$0xff]   ;;  %s447_s9 = scalar_lea.vmem %s296_s8, 320  ;;  %p452_p3 = scmp.lt.s32.totalorder %s296_s8, %s296_s8 }
  0x2d   :  { %363 = vmatpush1.bf16.msra.mxu1 %v384_v3  ;;  %193 = vmatpush1.bf16.msra.mxu0 %v384_v3  ;;  %v59_v16 = vld [vmem:[#allocation3 + $0x20] sm:$0x33]  ;;  %p448_p2 = scmp.ne.s32.totalorder %s296_s8, %s447_s9  ;;  %p453_p4 = scmp.lt.s32.totalorder %s447_s9, %s447_s9 }
  0x2e   :  { %352 = vmatprep.subr.bf16.mxu1 %v481_v0  ;;  %194 = vmatprep.subr.bf16.mxu0 %v481_v0  ;;  %v398_v18 = vld [vmem:[#allocation3] ss:$8 sps:$4 sm:$0xff]   ;;  %v313_v19 = vcombine.high %v59_v16, %v59_v16  ;;  %v312_v20 = vcombine.low %v59_v16, %v59_v16 }
  0x2f   :  { %v54_v31 = vld [vmem:[#allocation2 + $0x20] sm:$0xf]  ;;  %p454_p5 = por %p453_p4, %p452_p3 }
  0x31   :  { %364 = vmatpush1.bf16.msra.mxu1 %v385_v4  ;;  %195 = vmatpush1.bf16.msra.mxu0 %v385_v4  ;;  %p455_p6 = pnand %p454_p5, %p448_p2 }
  0x32   :  { %353 = vmatprep.subr.bf16.mxu1 %v481_v0  ;;  %196 = vmatprep.subr.bf16.mxu0 %v481_v0 }
  0x35   :  { %365 = vmatpush1.bf16.msra.mxu1 %v386_v5  ;;  %197 = vmatpush1.bf16.msra.mxu0 %v386_v5 }
  0x36   :  { %354 = vmatprep.subr.bf16.mxu1 %v481_v0  ;;  %198 = vmatprep.subr.bf16.mxu0 %v481_v0 }
  0x39   :  { %366 = vmatpush1.bf16.msra.mxu1 %v387_v7  ;;  %199 = vmatpush1.bf16.msra.mxu0 %v387_v7 }
  0x3a   :  { %355 = vmatprep.subr.bf16.mxu1 %v481_v0  ;;  %200 = vmatprep.subr.bf16.mxu0 %v481_v0 }
  0x3d   :  { %367 = vmatpush1.bf16.msra.mxu1 %v388_v9  ;;  %201 = vmatpush1.bf16.msra.mxu0 %v388_v9 }
  0x3e   :  { %356 = vmatprep.subr.bf16.mxu1 %v481_v0  ;;  %202 = vmatprep.subr.bf16.mxu0 %v481_v0 }
  0x41   :  { %368 = vmatpush1.bf16.msra.mxu1 %v389_v10  ;;  %203 = vmatpush1.bf16.msra.mxu0 %v389_v10 }
  0x42   :  { %357 = vmatprep.subr.bf16.mxu1 %v481_v0  ;;  %204 = vmatprep.subr.bf16.mxu0 %v481_v0 }
  0x45   :  { %369 = vmatpush1.bf16.msra.mxu1 %v390_v11  ;;  %205 = vmatpush1.bf16.msra.mxu0 %v390_v11 }
  0x46   :  { %358 = vmatprep.subr.bf16.mxu1 %v481_v0  ;;  %206 = vmatprep.subr.bf16.mxu0 %v481_v0 }
  0x49   :  { %370 = vmatpush1.bf16.msra.mxu1 %v391_v12  ;;  %207 = vmatpush1.bf16.msra.mxu0 %v391_v12 }
  0x4a   :  { %359 = vmatprep.subr.bf16.mxu1 %v481_v0  ;;  %208 = vmatprep.subr.bf16.mxu0 %v481_v0 }
  0x4d   :  { %371 = vmatpush1.bf16.msra.mxu1 %v392_v13  ;;  %209 = vmatpush1.bf16.msra.mxu0 %v392_v13 }
  0x4e   :  { %360 = vmatprep.subr.bf16.mxu1 %v481_v0  ;;  %210 = vmatprep.subr.bf16.mxu0 %v481_v0 }
  0x51   :  { %372 = vmatpush1.bf16.msra.mxu1 %v393_v14  ;;  %211 = vmatpush1.bf16.msra.mxu0 %v393_v14 }
  0x52   :  { %361 = vmatprep.subr.bf16.mxu1 %v481_v0  ;;  %212 = vmatprep.subr.bf16.mxu0 %v481_v0 }
  0x55   :  { %373 = vmatpush1.bf16.msra.mxu1 %v394_v15  ;;  %213 = vmatpush1.bf16.msra.mxu0 %v394_v15 }
  0x58   :  { %231 = vmatmul.mubr.bf16.vlgmr.msra.gmra.mrb[0].mxu1 %v395_v17  ;;  %223 = vmatmul.mubr.bf16.vlgmr.msra.gmra.mrb[0].mxu0 %v398_v18 }
  0x59   :  { %328 = vmatprep.mubr.msk.bf16.mxu1 %vm180_vm0, %v313_v19 }
  0x60   :  { %239 = vmatmul.mubr.bf16.gmra.mrb[4].mxu1 %v312_v20 }
 0x12b   :  { %v232_v21 = vpop.f32.mrb[0].mxu1  ;;  %v224_v22 = vpop.f32.mrb[0].mxu0 }
 0x12c   :  { %v234_v23 = vpop.f32.mrb[1].mxu1  ;;  %v226_v24 = vpop.f32.mrb[1].mxu0 }
 0x12d   :  { %v235_v25 = vpop.f32.mrb[2].mxu1  ;;  %v227_v26 = vpop.f32.mrb[2].mxu0 }
 0x12e   :  { %v237_v27 = vpop.f32.mrb[3].mxu1  ;;  %v229_v28 = vpop.f32.mrb[3].mxu0  ;;  %v342_v29 = vpack.c.bf16 %v227_v26, %v224_v22  ;;  %v347_v30 = vpack.c.bf16 %v235_v25, %v232_v21 }
 0x130   :  { %343 = vst [vmem:[#allocation8] sm:$0xff] %v342_v29   ;;  %349 = vst [vmem:[#allocation8 + $0x8] sm:$0xff] %v347_v30  }
 0x133   :  { %v240_v32 = vpop.f32.mrb[4].mxu1 }
 0x134   :  { %v250_v33 = vadd.f32 %v240_v32, %v54_v31  ;;  %v242_v34 = vpop.f32.mrb[5].mxu1 }
 0x135   :  { %v243_v35 = vpop.f32.mrb[6].mxu1 }
 0x136   :  { %255 = vst [vmem:[#allocation2 + $0x20] sm:$0xf] %v250_v33  ;;  %v244_v36 = vpop.f32.mrb[7].mxu1 }
 0x13d   :  { %v263_v37 = vld [vmem:[#allocation2 + $0x20] sm:$0xf] }
 0x13e   :  { %v338_v38 = vpack.c.bf16 %v263_v37, %v263_v37 }
 0x140   :  { %289 = vst [vmem:[#allocation8 + $0x10] sm:$0x3] %v338_v38 }
 0x141   :  { %458 = shalt.err (!%p455_p6)
}
 0x142   :  { %s459_s12 = scalar_lea.hbm %s570_s2, 320 }
 0x143   :  { %p460_p7 = scmp.ne.s32.totalorder %s570_s2, %s459_s12  ;;  %p463_p8 = scmp.lt.u32.totalorder %s459_s12, %s570_s2 }
 0x145   :  { %p465_p9 = pnand %p463_p8, %p460_p7 }
 0x147   :  { %468 = shalt.err (!%p465_p9)
}
 0x148   :  { %301 = dma.vmem_to_hbm [thread:$0]  %s296_s8, 320, %s570_s2, [#allocation5], %s479_s0, %s479_s0, %s480_s5  }
 0x149   :  { %473 = dma.done.wait [#allocation5], 320  }
 0x14a   :  { %474 = vsyncadd [#allocation5], 4294966976 }
 0x14b   :  { %305 = vsyncpa [#allocation4], 1 }
 0x14c   :  { %306 = vsyncpa [#allocation7], 1 }
 0x14d   :  { %307 = vsyncpa [#allocation5], 1 }

</bundles_post_ra>
